<compile_context>
chip_gen: v6e
topology: v6e:2x2x1
jax: 0.10.0
libtpu: 0.0.40
codegen_flags: <defaults>
</compile_context>

<pallas_src>
import math

import jax
import jax.numpy as jnp
from jax import lax
from jax.experimental import pallas as pl
from jax.experimental.pallas import tpu as pltpu


def _ffn_kernel(x_ref, w1_ref, b1_ref, w2_ref, b2_ref, o_ref, acc_ref):
    k = pl.program_id(1)

    @pl.when(k == 0)
    def _():
        acc_ref[...] = jnp.zeros_like(acc_ref)

    # First matmul: operands in their native dtype (bf16 MXU fast path if bf16),
    # f32 accumulation.
    h = jnp.dot(x_ref[...], w1_ref[...], preferred_element_type=jnp.float32)
    h = h + b1_ref[...].astype(jnp.float32)

    # Exact erf-based GELU (matches F.gelu default), in f32 on the VPU.
    # TODO(synk): if tanh-approx GELU is acceptable, jnp.tanh moves this to the EUP.
    g = 0.5 * h * (1.0 + lax.erf(h * (1.0 / math.sqrt(2.0))))

    # Second matmul, accumulated over the ffn_dim (K) grid axis.
    acc_ref[...] += jnp.dot(g.astype(w2_ref.dtype), w2_ref[...],
                            preferred_element_type=jnp.float32)

    @pl.when(k == pl.num_programs(1) - 1)
    def _():
        o_ref[...] = (acc_ref[...] + b2_ref[...].astype(jnp.float32)).astype(o_ref.dtype)


def _round_up(x, mult):
    return ((x + mult - 1) // mult) * mult


def feed_forward_network(x, w1, b1, w2, b2, *, block_m=None, block_k=None):
    """x: (..., dim). w1: (dim, ffn_dim), b1: (ffn_dim,), w2: (ffn_dim, dim),
    b2: (dim,). Returns same shape/dtype as x (y = linear2(gelu(linear1(x))))."""
    orig_shape = x.shape
    dim = orig_shape[-1]
    ffn_dim = w1.shape[1]
    x2d = x.reshape(-1, dim)
    m = x2d.shape[0]

    # --- M (token) tiling: 8-aligned, capped at 256 so the grid has multiple
    # steps for pipelining / megacore sharding on realistic token counts.
    if block_m is None:
        block_m = 256 if m >= 256 else _round_up(m, 8)
    block_m = _round_up(min(block_m, _round_up(m, 8)), 8)

    # --- K (ffn_dim) tiling: keep the hidden dim fully resident while it is
    # small; tile it (multiple of 128) once weights/intermediates get big so the
    # kernel also fits v7x's 64 MiB VMEM.
    if block_k is None:
        if ffn_dim > 2048 and ffn_dim % 512 == 0:
            block_k = 512
        else:
            block_k = ffn_dim
    if block_k != ffn_dim:
        # TODO(synk): pad ffn_dim instead of asserting when it is not divisible.
        assert block_k % 128 == 0 and ffn_dim % block_k == 0

    m_tiles = pl.cdiv(m, block_m)
    k_tiles = pl.cdiv(ffn_dim, block_k)

    # Zero-pad the ragged last M tile (keeps erf/matmul away from garbage rows).
    m_pad = m_tiles * block_m
    if m_pad != m:
        x2d = jnp.pad(x2d, ((0, m_pad - m), (0, 0)))

    b1_2d = b1.reshape(1, ffn_dim)
    b2_2d = b2.reshape(1, dim)

    # Single-buffer operands whose block never changes (halves weight VMEM);
    # double-buffer the W1/W2/b1 slabs only when they actually cycle over K.
    resident = pl.Buffered(buffer_count=1)
    w_mode = resident if k_tiles == 1 else pl.Buffered(buffer_count=2)

    out = pl.pallas_call(
        _ffn_kernel,
        out_shape=jax.ShapeDtypeStruct((m_pad, dim), x.dtype),
        grid_spec=pltpu.PrefetchScalarGridSpec(
            num_scalar_prefetch=0,
            grid=(m_tiles, k_tiles),
            in_specs=[
                pl.BlockSpec((block_m, dim), lambda i, k: (i, 0)),            # x tile
                pl.BlockSpec((dim, block_k), lambda i, k: (0, k),
                             pipeline_mode=w_mode),                           # W1 slab
                pl.BlockSpec((1, block_k), lambda i, k: (0, k),
                             pipeline_mode=w_mode),                           # b1 slab
                pl.BlockSpec((block_k, dim), lambda i, k: (k, 0),
                             pipeline_mode=w_mode),                           # W2 slab
                pl.BlockSpec((1, dim), lambda i, k: (0, 0),
                             pipeline_mode=resident),                         # b2
            ],
            out_specs=pl.BlockSpec((block_m, dim), lambda i, k: (i, 0)),
            scratch_shapes=[pltpu.VMEM((block_m, dim), jnp.float32)],
        ),
        compiler_params=pltpu.CompilerParams(
            dimension_semantics=("parallel", "arbitrary"),
            vmem_limit_bytes=64 * 1024 * 1024,
        ),
    )(x2d, w1, b1_2d, w2, b2_2d)

    if m_pad != m:
        out = out[:m]
    return out.reshape(orig_shape)


def _init_linear_params(key, in_features, out_features):
    """Deterministic init matching nn.Linear's uniform(-1/sqrt(fan_in)) ranges."""
    kw, kb = jax.random.split(key)
    bound = 1.0 / math.sqrt(in_features)
    # stored as (in, out) so the kernel does x @ W
    w = jax.random.uniform(kw, (in_features, out_features), jnp.float32,
                           minval=-bound, maxval=bound)
    b = jax.random.uniform(kb, (out_features,), jnp.float32,
                           minval=-bound, maxval=bound)
    return w, b


def _reference(x, w1, b1, w2, b2):
    h = x @ w1 + b1
    g = 0.5 * h * (1.0 + lax.erf(h / math.sqrt(2.0)))
    return g @ w2 + b2


if __name__ == "__main__":
    key = jax.random.PRNGKey(0)
    k_x, k_l1, k_l2 = jax.random.split(key, 3)

    # Small but lane-dense shapes (last dim multiple of 128 -> unmasked stores).
    batch, seq, dim, ffn_dim = 2, 8, 128, 256
    x = jax.random.normal(k_x, (batch, seq, dim), jnp.float32)

    w1, b1 = _init_linear_params(k_l1, dim, ffn_dim)
    w2, b2 = _init_linear_params(k_l2, ffn_dim, dim)

    y_ref = _reference(x, w1, b1, w2, b2)

    # 1) default tiling (single M tile, K fully resident)
    y = jax.block_until_ready(feed_forward_network(x, w1, b1, w2, b2))
    assert y.shape == x.shape
    assert jnp.allclose(y, y_ref, atol=1e-4, rtol=1e-4)

    # 2) multi-tile M and K path (exercises pipeline + accumulator)
    y2 = jax.block_until_ready(
        feed_forward_network(x, w1, b1, w2, b2, block_m=8, block_k=128))
    assert jnp.allclose(y2, y_ref, atol=1e-4, rtol=1e-4)

    # 3) ragged M (m not a multiple of block_m) -> zero-pad + slice path
    x3 = x[:, :5, :]                                   # m = 10
    y3 = jax.block_until_ready(
        feed_forward_network(x3, w1, b1, w2, b2, block_m=8, block_k=128))
    assert jnp.allclose(y3, _reference(x3, w1, b1, w2, b2), atol=1e-4, rtol=1e-4)

    print("KERNEL_OK")
</pallas_src>

<mosaic_0001>
module attributes {stable_mosaic.version = 11 : i64} {
  func.func @_ffn_kernel(%arg0: i32, %arg1: i32, %arg2: memref<16x128xf32, #tpu.memory_space<vmem>>, %arg3: memref<128x256xf32, #tpu.memory_space<vmem>>, %arg4: memref<1x256xf32, #tpu.memory_space<vmem>>, %arg5: memref<256x128xf32, #tpu.memory_space<vmem>>, %arg6: memref<1x128xf32, #tpu.memory_space<vmem>>, %arg7: memref<16x128xf32, #tpu.memory_space<vmem>>, %arg8: memref<16x128xf32, #tpu.memory_space<vmem>>) attributes {dimension_semantics = [#tpu.dimension_semantics<parallel>, #tpu.dimension_semantics<arbitrary>], iteration_bounds = array<i64: 1, 1>, scalar_prefetch = 0 : i64, scratch_operands = 1 : i64, tpu.core_type = #tpu.core_type<tc>, window_params = [{transform_indices = @transform_0, window_bounds = array<i64: 16, 128>}, {pipeline_mode = #tpu.pipeline_mode<synchronous>, transform_indices = @transform_1, window_bounds = array<i64: 128, 256>}, {pipeline_mode = #tpu.pipeline_mode<synchronous>, transform_indices = @transform_2, window_bounds = array<i64: 1, 256>}, {pipeline_mode = #tpu.pipeline_mode<synchronous>, transform_indices = @transform_3, window_bounds = array<i64: 256, 128>}, {pipeline_mode = #tpu.pipeline_mode<synchronous>, transform_indices = @transform_4, window_bounds = array<i64: 1, 128>}, {transform_indices = @transform_5, window_bounds = array<i64: 16, 128>}]} {
    %c0_i32 = arith.constant 0 : i32
    %0 = arith.cmpi eq, %arg1, %c0_i32 : i32
    %1 = arith.extui %0 : i1 to i32
    %c0_i32_0 = arith.constant 0 : i32
    %2 = arith.cmpi ne, %1, %c0_i32_0 : i32
    scf.if %2 {
      %cst_18 = arith.constant 0.000000e+00 : f32
      %25 = vector.broadcast %cst_18 : f32 to vector<16x128xf32>
      %c0_19 = arith.constant 0 : index
      %c0_20 = arith.constant 0 : index
      %26 = vector.load %arg8[%c0_19, %c0_20] : memref<16x128xf32, #tpu.memory_space<vmem>>, vector<16x128xf32>
      tpu.vector_store %arg8[%c0_19, %c0_20], %25 {strides = array<i32>} : memref<16x128xf32, #tpu.memory_space<vmem>>, vector<16x128xf32>,
    } else {
    }
    %c0 = arith.constant 0 : index
    %c0_1 = arith.constant 0 : index
    %3 = vector.load %arg2[%c0, %c0_1] : memref<16x128xf32, #tpu.memory_space<vmem>>, vector<16x128xf32>
    %c0_2 = arith.constant 0 : index
    %c0_3 = arith.constant 0 : index
    %4 = vector.load %arg3[%c0_2, %c0_3] : memref<128x256xf32, #tpu.memory_space<vmem>>, vector<128x256xf32>
    %cst = arith.constant dense<0.000000e+00> : vector<16x256xf32>
    %5 = tpu.matmul %3, %4, %cst {dimension_numbers = #tpu.dot_dimension_numbers<[1], [0], [0], [1], [0, 0, 1, 1], [], []>} : vector<16x128xf32>, vector<128x256xf32>, vector<16x256xf32> -> vector<16x256xf32>
    %c0_4 = arith.constant 0 : index
    %c0_5 = arith.constant 0 : index
    %6 = vector.load %arg4[%c0_4, %c0_5] : memref<1x256xf32, #tpu.memory_space<vmem>>, vector<1x256xf32>
    %7 = vector.broadcast %6 : vector<1x256xf32> to vector<16x256xf32>
    %8 = arith.addf %5, %7 : vector<16x256xf32>
    %cst_6 = arith.constant 5.000000e-01 : f32
    %9 = vector.broadcast %cst_6 : f32 to vector<16x256xf32>
    %10 = arith.mulf %9, %8 : vector<16x256xf32>
    %cst_7 = arith.constant 0.707106769 : f32
    %11 = vector.broadcast %cst_7 : f32 to vector<16x256xf32>
    %12 = arith.mulf %8, %11 : vector<16x256xf32>
    %13 = math.erf %12 : vector<16x256xf32>
    %cst_8 = arith.constant 1.000000e+00 : f32
    %14 = vector.broadcast %cst_8 : f32 to vector<16x256xf32>
    %15 = arith.addf %14, %13 : vector<16x256xf32>
    %16 = arith.mulf %10, %15 : vector<16x256xf32>
    %c0_9 = arith.constant 0 : index
    %c0_10 = arith.constant 0 : index
    %17 = vector.load %arg8[%c0_9, %c0_10] : memref<16x128xf32, #tpu.memory_space<vmem>>, vector<16x128xf32>
    %c0_11 = arith.constant 0 : index
    %c0_12 = arith.constant 0 : index
    %18 = vector.load %arg5[%c0_11, %c0_12] : memref<256x128xf32, #tpu.memory_space<vmem>>, vector<256x128xf32>
    %cst_13 = arith.constant dense<0.000000e+00> : vector<16x128xf32>
    %19 = tpu.matmul %16, %18, %cst_13 {dimension_numbers = #tpu.dot_dimension_numbers<[1], [0], [0], [1], [0, 0, 1, 1], [], []>} : vector<16x256xf32>, vector<256x128xf32>, vector<16x128xf32> -> vector<16x128xf32>
    %20 = arith.addf %17, %19 : vector<16x128xf32>
    %c0_14 = arith.constant 0 : index
    %c0_15 = arith.constant 0 : index
    %21 = vector.load %arg8[%c0_14, %c0_15] : memref<16x128xf32, #tpu.memory_space<vmem>>, vector<16x128xf32>
    tpu.vector_store %arg8[%c0_14, %c0_15], %20 {strides = array<i32>} : memref<16x128xf32, #tpu.memory_space<vmem>>, vector<16x128xf32>,
    %c0_i32_16 = arith.constant 0 : i32
    %22 = arith.cmpi eq, %arg1, %c0_i32_16 : i32
    %23 = arith.extui %22 : i1 to i32
    %c0_i32_17 = arith.constant 0 : i32
    %24 = arith.cmpi ne, %23, %c0_i32_17 : i32
    scf.if %24 {
      %c0_18 = arith.constant 0 : index
      %c0_19 = arith.constant 0 : index
      %25 = vector.load %arg8[%c0_18, %c0_19] : memref<16x128xf32, #tpu.memory_space<vmem>>, vector<16x128xf32>
      %c0_20 = arith.constant 0 : index
      %c0_21 = arith.constant 0 : index
      %26 = vector.load %arg6[%c0_20, %c0_21] : memref<1x128xf32, #tpu.memory_space<vmem>>, vector<1x128xf32>
      %27 = vector.broadcast %26 : vector<1x128xf32> to vector<16x128xf32>
      %28 = arith.addf %25, %27 : vector<16x128xf32>
      %c0_22 = arith.constant 0 : index
      %c0_23 = arith.constant 0 : index
      %29 = vector.load %arg7[%c0_22, %c0_23] : memref<16x128xf32, #tpu.memory_space<vmem>>, vector<16x128xf32>
      tpu.vector_store %arg7[%c0_22, %c0_23], %28 {strides = array<i32>} : memref<16x128xf32, #tpu.memory_space<vmem>>, vector<16x128xf32>,
    } else {
    }
    return
  }
  func.func @transform_0(%arg0: i32, %arg1: i32) -> (i32, i32) {
    %c0_i32 = arith.constant 0 : i32
    %c0_i32_0 = arith.constant 0 : i32
    return %arg0, %c0_i32 : i32, i32
  }
  func.func @transform_1(%arg0: i32, %arg1: i32) -> (i32, i32) {
    %c0_i32 = arith.constant 0 : i32
    %c0_i32_0 = arith.constant 0 : i32
    return %c0_i32, %arg1 : i32, i32
  }
  func.func @transform_2(%arg0: i32, %arg1: i32) -> (i32, i32) {
    %c0_i32 = arith.constant 0 : i32
    %c0_i32_0 = arith.constant 0 : i32
    return %c0_i32, %arg1 : i32, i32
  }
  func.func @transform_3(%arg0: i32, %arg1: i32) -> (i32, i32) {
    %c0_i32 = arith.constant 0 : i32
    %c0_i32_0 = arith.constant 0 : i32
    return %arg1, %c0_i32 : i32, i32
  }
  func.func @transform_4(%arg0: i32, %arg1: i32) -> (i32, i32) {
    %c0_i32 = arith.constant 0 : i32
    %c0_i32_0 = arith.constant 0 : i32
    %c0_i32_1 = arith.constant 0 : i32
    return %c0_i32, %c0_i32_0 : i32, i32
  }
  func.func @transform_5(%arg0: i32, %arg1: i32) -> (i32, i32) {
    %c0_i32 = arith.constant 0 : i32
    %c0_i32_0 = arith.constant 0 : i32
    return %arg0, %c0_i32 : i32, i32
  }
}

</mosaic_0001>

<bundles_post_ra>
// kernel: tpu_custom_call.1
= control target key start
LH: loop header
LB: loop body
LE: loop exit
PB: predicated region body
PF: predicated region fallthrough
CT: control target
= control target key end

     0   :  { %10 = vsyncpa [#allocation4], 0  ;;  %s568_s0 = inlined_call_operand.hbm [shape: f32[16,128], index: 0, kind: input, shape index: {}]   ;;  %s569_s1 = inlined_call_operand.hbm [shape: f32[128,256], index: 1, kind: input, shape index: {}]   ;;  %s570_s2 = inlined_call_operand.vmem [shape: f32[1,256], index: 2, kind: input, shape index: {}]   ;;  %s571_s3 = inlined_call_operand.hbm [shape: f32[256,128], index: 3, kind: input, shape index: {}]   ;;  %s572_s4 = inlined_call_operand.vmem [shape: f32[1,128], index: 4, kind: input, shape index: {}]   ;;  %s573_s5 = inlined_call_operand.hbm [shape: f32[16,128], index: 5, kind: output, shape index: {}]  }
   0x1   :  { %11 = vsyncpa [#allocation7], 0 }
   0x2   :  { %12 = vsyncpa [#allocation5], 0  ;;  %s500_s18 = smov [#allocation6]  }
   0x3   :  { %s30_s19 = sshll.u32 %s500_s18, 4  ;;  %s31_s19 = int_to_ptr.vmem [resolvable:$true] %s30_s19 }
   0x4   :  { %s422_s20 = scalar_lea.vmem %s31_s19, 4096  ;;  %p427_p1 = scmp.lt.s32.totalorder %s31_s19, %s31_s19 }
   0x5   :  { %p423_p0 = scmp.ne.s32.totalorder %s31_s19, %s422_s20  ;;  %p428_p2 = scmp.lt.s32.totalorder %s422_s20, %s422_s20 }
   0x7   :  { %p429_p3 = por %p428_p2, %p427_p1 }
   0x9   :  { %p430_p4 = pnand %p429_p3, %p423_p0 }
   0xb   :  { %433 = shalt.err (!%p430_p4)
}
   0xc   :  { %s501_s21 = smov 256   ;;  %s502_s22 = smov 16  }
   0xd   :  { %36 = dma.hbm_to_vmem [thread:$0]  %s569_s1, 4096, %s31_s19, [#allocation7], %s501_s21, %s501_s21, %s502_s22  }
   0xe   :  { %s503_s25 = smov [#allocation3]  }
   0xf   :  { %s18_s26 = sshll.u32 %s503_s25, 4  ;;  %s19_s26 = int_to_ptr.vmem [resolvable:$true] %s18_s26 }
  0x10   :  { %s442_s27 = scalar_lea.vmem %s19_s26, 256  ;;  %p447_p6 = scmp.lt.s32.totalorder %s19_s26, %s19_s26 }
  0x11   :  { %p443_p5 = scmp.ne.s32.totalorder %s19_s26, %s442_s27  ;;  %p448_p7 = scmp.lt.s32.totalorder %s442_s27, %s442_s27 }
  0x13   :  { %p449_p8 = por %p448_p7, %p447_p6 }
  0x15   :  { %p450_p9 = pnand %p449_p8, %p443_p5 }
  0x17   :  { %453 = shalt.err (!%p450_p9)
}
  0x18   :  { %s504_s28 = smov 128   ;;  %s505_s29 = smov 8  }
  0x19   :  { %24 = dma.hbm_to_vmem [thread:$0]  %s568_s0, 256, %s19_s26, [#allocation4], %s504_s28, %s504_s28, %s505_s29  }
  0x1a   :  { %s506_s1 = smov [#allocation8]  }
  0x1b   :  { %s44_s7 = sshll.u32 %s506_s1, 4  ;;  %s45_s7 = int_to_ptr.vmem [resolvable:$true] %s44_s7 }
  0x1c   :  { %s462_s8 = scalar_lea.vmem %s45_s7, 4096  ;;  %p467_p11 = scmp.lt.s32.totalorder %s45_s7, %s45_s7 }
  0x1d   :  { %p463_p10 = scmp.ne.s32.totalorder %s45_s7, %s462_s8  ;;  %p468_p12 = scmp.lt.s32.totalorder %s462_s8, %s462_s8 }
  0x1f   :  { %p469_p13 = por %p468_p12, %p467_p11 }
  0x21   :  { %p470_p0 = pnand %p469_p13, %p463_p10 }
  0x23   :  { %473 = shalt.err (!%p470_p0)
}
  0x24   :  { %50 = dma.hbm_to_vmem [thread:$0]  %s571_s3, 4096, %s45_s7, [#allocation7], %s504_s28, %s504_s28, %s505_s29  }
  0x25   :  { %494 = dma.done.wait [#allocation4], 256  }
  0x26   :  { %495 = vsyncadd [#allocation4], 4294967040 }
  0x27   :  { %496 = dma.done.wait [#allocation7], 8192  }
  0x28   :  { %497 = vsyncadd [#allocation7], 4294959104  ;;  %v507_v0 = vmov 0.0   ;;  %v101_v1 = vld [vmem:[#allocation6 + $0xf8] sm:$0xff]  ;;  %v100_v2 = vld [vmem:[#allocation6 + $0xf0] sm:$0xff]  ;;  %s508_s12 = smov [#allocation9]  }
  0x29   :  { %178 = vmatprep.mubr.f32.mxu0 %v507_v0  ;;  %v99_v3 = vld [vmem:[#allocation6 + $0xe8] sm:$0xff]  ;;  %114 = vmatprep.subr.mxu0 %v101_v1  ;;  %v98_v4 = vld [vmem:[#allocation6 + $0xe0] sm:$0xff]  ;;  %v97_v5 = vld [vmem:[#allocation6 + $0xd8] sm:$0xff]  ;;  %s345_s13 = sshll.u32 %s508_s12, 4  ;;  %s346_s13 = int_to_ptr.vmem [resolvable:$true] %s345_s13 }
  0x2a   :  { %115 = vmatpush1.msra.mxu0 %v100_v2  ;;  %v96_v6 = vld [vmem:[#allocation6 + $0xd0] sm:$0xff]  ;;  %v95_v7 = vld [vmem:[#allocation6 + $0xc8] sm:$0xff]  ;;  %v94_v8 = vld [vmem:[#allocation6 + $0xc0] sm:$0xff]  ;;  %s474_s14 = scalar_lea.vmem %s346_s13, 256  ;;  %p479_p2 = scmp.lt.s32.totalorder %s346_s13, %s346_s13 }
  0x2b   :  { %116 = vmatprep.subr.mxu0 %v99_v3  ;;  %v93_v9 = vld [vmem:[#allocation6 + $0xb8] sm:$0xff]  ;;  %v92_v10 = vld [vmem:[#allocation6 + $0xb0] sm:$0xff]  ;;  %v91_v11 = vld [vmem:[#allocation6 + $0xa8] sm:$0xff]  ;;  %v104_v3 = vlaneseq  ;;  %p475_p1 = scmp.ne.s32.totalorder %s346_s13, %s474_s14  ;;  %p480_p3 = scmp.lt.s32.totalorder %s474_s14, %s474_s14 }
  0x2c   :  { %117 = vmatpush1.msra.mxu0 %v98_v4  ;;  %v90_v12 = vld [vmem:[#allocation6 + $0xa0] sm:$0xff]  ;;  %v89_v13 = vld [vmem:[#allocation6 + $0x98] sm:$0xff]  ;;  %v88_v14 = vld [vmem:[#allocation6 + $0x90] sm:$0xff] }
  0x2d   :  { %118 = vmatprep.subr.mxu0 %v97_v5  ;;  %v244_v15 = vld [vmem:[#allocation8 + $0xf8] sm:$0xff]  ;;  %v87_v17 = vld [vmem:[#allocation6 + $0x88] sm:$0xff]  ;;  %v243_v18 = vld [vmem:[#allocation8 + $0xf0] sm:$0xff]  ;;  %v105_v4 = vshrl.u32 %v104_v3, 7  ;;  %p481_p4 = por %p480_p3, %p479_p2 }
  0x2e   :  { %119 = vmatpush1.msra.mxu0 %v96_v6  ;;  %v228_v16 = vld [vmem:[#allocation8 + $0x78] sm:$0xff]  ;;  %359 = vmatprep.subr.mxu1 %v244_v15  ;;  %v227_v19 = vld [vmem:[#allocation8 + $0x70] sm:$0xff]  ;;  %v86_v20 = vld [vmem:[#allocation6 + $0x80] sm:$0xff] }
  0x2f   :  { %120 = vmatprep.subr.mxu0 %v95_v7  ;;  %360 = vmatpush3.msra.mxu1 %v228_v16  ;;  %v242_v21 = vld [vmem:[#allocation8 + $0xe8] sm:$0xff]  ;;  %v85_v22 = vld [vmem:[#allocation6 + $0x78] sm:$0xff]  ;;  %v84_v24 = vld [vmem:[#allocation6 + $0x70] sm:$0xff]  ;;  %v106_v5 = vsub.s32 0, %v105_v4  ;;  %v110_v7 = vsub.s32 1, %v105_v4  ;;  %p482_p5 = pnand %p481_p4, %p475_p1 }
  0x30   :  { %121 = vmatpush1.msra.mxu0 %v94_v8  ;;  %361 = vmatprep.subr.mxu1 %v243_v18  ;;  %v226_v23 = vld [vmem:[#allocation8 + $0x68] sm:$0xff]  ;;  %v82_v26 = vld [vmem:[#allocation6 + $0x60] sm:$0xff]  ;;  %v81_v27 = vld [vmem:[#allocation6 + $0x58] sm:$0xff] }
  0x31   :  { %122 = vmatprep.subr.mxu0 %v93_v9  ;;  %362 = vmatpush3.msra.mxu1 %v227_v19  ;;  %v83_v25 = vld [vmem:[#allocation6 + $0x68] sm:$0xff]  ;;  %v80_v28 = vld [vmem:[#allocation6 + $0x50] sm:$0xff]  ;;  %v78_v30 = vld [vmem:[#allocation6 + $0x40] sm:$0xff] }
  0x32   :  { %123 = vmatpush1.msra.mxu0 %v92_v10  ;;  %363 = vmatprep.subr.mxu1 %v242_v21  ;;  %v79_v29 = vld [vmem:[#allocation6 + $0x48] sm:$0xff]  ;;  %v77_v31 = vld [vmem:[#allocation6 + $0x38] sm:$0xff]  ;;  %v76_v32 = vld [vmem:[#allocation6 + $0x30] sm:$0xff] }
  0x33   :  { %124 = vmatprep.subr.mxu0 %v91_v11  ;;  %364 = vmatpush3.msra.mxu1 %v226_v23  ;;  %v75_v33 = vld [vmem:[#allocation6 + $0x28] sm:$0xff]  ;;  %v74_v34 = vld [vmem:[#allocation6 + $0x20] sm:$0xff]  ;;  %v73_v35 = vld [vmem:[#allocation6 + $0x18] sm:$0xff] }
  0x34   :  { %125 = vmatpush1.msra.mxu0 %v90_v12  ;;  %v72_v36 = vld [vmem:[#allocation6 + $0x10] sm:$0xff]  ;;  %v71_v37 = vld [vmem:[#allocation6 + $0x8] sm:$0xff]  ;;  %v70_v38 = vld [vmem:[#allocation6] sm:$0xff] }
  0x35   :  { %126 = vmatprep.subr.mxu0 %v89_v13  ;;  %v68_v39 = vld [vmem:[#allocation3] sm:$0xff]  ;;  %v69_v40 = vld [vmem:[#allocation3 + $0x8] sm:$0xff]  ;;  %v241_v41 = vld [vmem:[#allocation8 + $0xe0] sm:$0xff] }
  0x36   :  { %127 = vmatpush1.msra.mxu0 %v88_v14  ;;  %365 = vmatprep.subr.mxu1 %v241_v41  ;;  %v225_v42 = vld [vmem:[#allocation8 + $0x60] sm:$0xff]  ;;  %v240_v43 = vld [vmem:[#allocation8 + $0xd8] sm:$0xff]  ;;  %v239_v45 = vld [vmem:[#allocation8 + $0xd0] sm:$0xff] }
  0x37   :  { %128 = vmatprep.subr.mxu0 %v87_v17  ;;  %366 = vmatpush3.msra.mxu1 %v225_v42  ;;  %v224_v44 = vld [vmem:[#allocation8 + $0x58] sm:$0xff]  ;;  %v223_v46 = vld [vmem:[#allocation8 + $0x50] sm:$0xff]  ;;  %v238_v47 = vld [vmem:[#allocation8 + $0xc8] sm:$0xff] }
  0x38   :  { %129 = vmatpush1.msra.mxu0 %v86_v20  ;;  %367 = vmatprep.subr.mxu1 %v240_v43  ;;  %v222_v48 = vld [vmem:[#allocation8 + $0x48] sm:$0xff]  ;;  %v237_v49 = vld [vmem:[#allocation8 + $0xc0] sm:$0xff]  ;;  %v236_v51 = vld [vmem:[#allocation8 + $0xb8] sm:$0xff] }
  0x39   :  { %130 = vmatprep.subr.mxu0 %v85_v22  ;;  %368 = vmatpush3.msra.mxu1 %v224_v44  ;;  %v221_v50 = vld [vmem:[#allocation8 + $0x40] sm:$0xff]  ;;  %v220_v52 = vld [vmem:[#allocation8 + $0x38] sm:$0xff]  ;;  %v235_v53 = vld [vmem:[#allocation8 + $0xb0] sm:$0xff] }
  0x3a   :  { %131 = vmatpush1.msra.mxu0 %v84_v24  ;;  %369 = vmatprep.subr.mxu1 %v239_v45  ;;  %v219_v54 = vld [vmem:[#allocation8 + $0x30] sm:$0xff]  ;;  %v234_v55 = vld [vmem:[#allocation8 + $0xa8] sm:$0xff]  ;;  %v233_v57 = vld [vmem:[#allocation8 + $0xa0] sm:$0xff] }
  0x3b   :  { %132 = vmatprep.subr.mxu0 %v83_v25  ;;  %370 = vmatpush3.msra.mxu1 %v223_v46  ;;  %v218_v56 = vld [vmem:[#allocation8 + $0x28] sm:$0xff]  ;;  %v217_v58 = vld [vmem:[#allocation8 + $0x20] sm:$0xff]  ;;  %v232_v59 = vld [vmem:[#allocation8 + $0x98] sm:$0xff] }
  0x3c   :  { %133 = vmatpush1.msra.mxu0 %v82_v26  ;;  %371 = vmatprep.subr.mxu1 %v238_v47  ;;  %v216_v60 = vld [vmem:[#allocation8 + $0x18] sm:$0xff]  ;;  %v231_v61 = vld [vmem:[#allocation8 + $0x90] sm:$0xff]  ;;  %v230_v63 = vld [vmem:[#allocation8 + $0x88] sm:$0xff] }
  0x3d   :  { %134 = vmatprep.subr.mxu0 %v81_v27  ;;  %372 = vmatpush3.msra.mxu1 %v222_v48  ;;  %v215_v62 = vld [vmem:[#allocation8 + $0x10] sm:$0xff]  ;;  %v229_v1 = vld [vmem:[#allocation8 + $0x80] sm:$0xff] }
  0x3e   :  { %135 = vmatpush1.msra.mxu0 %v80_v28  ;;  %373 = vmatprep.subr.mxu1 %v237_v49  ;;  %v213_v2 = vld [vmem:[#allocation8] sm:$0xff]  ;;  %v102_v6 = vld [vmem:[%s570_s2] sm:$0x3] }
  0x3f   :  { %136 = vmatprep.subr.mxu0 %v79_v29  ;;  %374 = vmatpush3.msra.mxu1 %v221_v50  ;;  %v107_v8 = vrot.slane %v102_v6, %v106_v5  ;;  %v111_v9 = vrot.slane %v102_v6, %v110_v7 }
  0x40   :  { %137 = vmatpush1.msra.mxu0 %v78_v30  ;;  %375 = vmatprep.subr.mxu1 %v236_v51 }
  0x41   :  { %138 = vmatprep.subr.mxu0 %v77_v31  ;;  %376 = vmatpush3.msra.mxu1 %v220_v52 }
  0x42   :  { %139 = vmatpush1.msra.mxu0 %v76_v32  ;;  %377 = vmatprep.subr.mxu1 %v235_v53 }
  0x43   :  { %140 = vmatprep.subr.mxu0 %v75_v33  ;;  %378 = vmatpush3.msra.mxu1 %v219_v54 }
  0x44   :  { %141 = vmatpush1.msra.mxu0 %v74_v34  ;;  %379 = vmatprep.subr.mxu1 %v234_v55 }
  0x45   :  { %142 = vmatprep.subr.mxu0 %v73_v35  ;;  %380 = vmatpush3.msra.mxu1 %v218_v56 }
  0x46   :  { %143 = vmatpush1.msra.mxu0 %v72_v36  ;;  %381 = vmatprep.subr.mxu1 %v233_v57 }
  0x47   :  { %144 = vmatprep.subr.mxu0 %v71_v37  ;;  %382 = vmatpush3.msra.mxu1 %v217_v58 }
  0x48   :  { %145 = vmatpush1.msra.mxu0 %v70_v38  ;;  %383 = vmatprep.subr.mxu1 %v232_v59 }
  0x49   :  { %179 = vmatmul.mubr.f32.vlgmr.msra.gmra.mxu0 %v68_v39  ;;  %384 = vmatpush3.msra.mxu1 %v216_v60 }
  0x4a   :  { %184 = vmatprep.mubr.f32.mxu0 %v507_v0  ;;  %385 = vmatprep.subr.mxu1 %v231_v61  ;;  %v214_v0 = vld [vmem:[#allocation8 + $0x8] sm:$0xff] }
  0x4b   :  { %386 = vmatpush3.msra.mxu1 %v215_v62 }
  0x4c   :  { %387 = vmatprep.subr.mxu1 %v230_v63 }
  0x4d   :  { %185 = vmatmul.mubr.f32.gmra.mxu0 %v69_v40  ;;  %388 = vmatpush3.msra.mxu1 %v214_v0  ;;  %v358_v40 = vld [vmem:[%s572_s4] ss:$0 sm:$0xff] }
  0x4e   :  { %389 = vmatprep.subr.mxu1 %v229_v1 }
  0x4f   :  { %390 = vmatpush3.msra.mxu1 %v213_v2 }
 0x109   :  { %v180_v10 = vpop.f32.mrf.mxu0 }
 0x10a   :  { %v181_v11 = vadd.f32 %v180_v10, %v107_v8 }
 0x10b   :  { %v182_v12 = vpop.f32.mrf.mxu0 }
 0x10c   :  { %v195_v13 = vmul.f32 0.70710677, %v181_v11  ;;  %v183_v14 = vadd.f32 %v182_v12, %v111_v9  ;;  %v191_v28 = vmul.f32 0.5, %v181_v11 }
 0x10d   :  { %v186_v15 = vpop.f32.mrf.mxu0 }
 0x10e   :  { %406 = verf.f32 %v195_v13  ;;  %v196_v16 = vmul.f32 0.70710677, %v183_v14  ;;  %v187_v17 = vadd.f32 %v186_v15, %v107_v8  ;;  %v192_v25 = vmul.f32 0.5, %v183_v14 }
 0x10f   :  { %v188_v18 = vpop.f32.mrf.mxu0 }
 0x110   :  { %408 = verf.f32 %v196_v16  ;;  %v197_v19 = vmul.f32 0.70710677, %v187_v17  ;;  %v189_v20 = vadd.f32 %v188_v18, %v111_v9  ;;  %v193_v35 = vmul.f32 0.5, %v187_v17 }
 0x112   :  { %410 = verf.f32 %v197_v19  ;;  %v198_v21 = vmul.f32 0.70710677, %v189_v20  ;;  %v194_v33 = vmul.f32 0.5, %v189_v20 }
 0x114   :  { %412 = verf.f32 %v198_v21 }
 0x11b   :  { %v407_v22 = vpop.eup %406 }
 0x11c   :  { %v203_v24 = vadd.f32 1.0, %v407_v22 }
 0x11d   :  { %v409_v23 = vpop.eup %408 }
 0x11e   :  { %v204_v26 = vadd.f32 1.0, %v409_v23  ;;  %v207_v31 = vmul.f32 %v203_v24, %v191_v28 }
 0x11f   :  { %v411_v27 = vpop.eup %410 }
 0x120   :  { %v208_v29 = vmul.f32 %v204_v26, %v192_v25  ;;  %v205_v32 = vadd.f32 1.0, %v411_v27 }
 0x121   :  { %v413_v30 = vpop.eup %412 }
 0x122   :  { %309 = vmatprep.mubr.f32.mxu1 %v208_v29  ;;  %v206_v34 = vadd.f32 1.0, %v413_v30  ;;  %v209_v37 = vmul.f32 %v205_v32, %v193_v35 }
 0x123   :  { %310 = vmatmul.mubr.f32.vlgmr.msra.gmra.mxu1 %v207_v31 }
 0x124   :  { %v210_v36 = vmul.f32 %v206_v34, %v194_v33 }
 0x126   :  { %314 = vmatprep.mubr.f32.mxu1 %v210_v36 }
 0x127   :  { %315 = vmatmul.mubr.f32.gmra.mxu1 %v209_v37 }
 0x1e3   :  { %v391_v38 = vpop.f32.mrf.mxu1 }
 0x1e5   :  { %v392_v39 = vpop.f32.mrf.mxu1 }
 0x1e6   :  { %v393_v41 = vadd.f32 %v392_v39, %v391_v38 }
 0x1e7   :  { %v394_v42 = vpop.f32.mrf.mxu1 }
 0x1e8   :  { %v336_v43 = vadd.f32 %v393_v41, %v358_v40 }
 0x1e9   :  { %v395_v44 = vpop.f32.mrf.mxu1 }
 0x1ea   :  { %338 = vst [vmem:[#allocation9] sm:$0xff] %v336_v43  ;;  %v396_v45 = vadd.f32 %v395_v44, %v394_v42 }
 0x1ec   :  { %v337_v46 = vadd.f32 %v396_v45, %v358_v40 }
 0x1ee   :  { %339 = vst [vmem:[#allocation9 + $0x8] sm:$0xff] %v337_v46 }
 0x1ef   :  { %485 = shalt.err (!%p482_p5)
}
 0x1f0   :  { %351 = dma.vmem_to_hbm [thread:$0]  %s346_s13, 256, %s573_s5, [#allocation5], %s504_s28, %s504_s28, %s505_s29  }
 0x1f1   :  { %498 = dma.done.wait [#allocation5], 256  }
 0x1f2   :  { %499 = vsyncadd [#allocation5], 4294967040 }
 0x1f3   :  { %355 = vsyncpa [#allocation4], 1 }
 0x1f4   :  { %356 = vsyncpa [#allocation7], 1 }
 0x1f5   :  { %357 = vsyncpa [#allocation5], 1 }

</bundles_post_ra>
